<compile_context>
chip_gen: v6e
topology: v6e:2x2x1
jax: 0.10.0
libtpu: 0.0.40
codegen_flags: <defaults>
</compile_context>

<pallas_src>
import jax
import jax.numpy as jnp
from jax import lax
from jax.experimental import pallas as pl
from jax.experimental.pallas import tpu as pltpu

KSIZE = 3
EPS = 1e-5


def _vmem_capacity_bytes():
    """Per-core VMEM capacity; falls back to the smallest generation (v7x: 64 MiB/TC)."""
    try:
        cap = int(pltpu.get_tpu_info().vmem_capacity_bytes)
        if cap > 0:
            return cap
    except Exception:
        pass
    return 64 * 1024 * 1024


def _pick_tile_h(h, w, cin, cout, cbytes, vmem_budget, requested=None):
    """Largest legal row tile whose VMEM consumers fit the (generation-aware) budget.

    Legal tile heights divide H and keep the pass-2 output block lane dense
    ((tile_h * W) % 128 == 0); the whole image (tile_h == H) is always legal
    (full-extent block).
    """
    cands = sorted({d for d in range(1, h + 1)
                    if h % d == 0 and (d * w) % 128 == 0} | {h})
    # VMEM consumers (pass 2 is the binding pass):
    #   resident zero-padded image (x2 buffers across the batch axis), weights (x2),
    #   double-buffered f32 output block, conservative vreg/spill working set.
    fixed = (2 * (h + 2) * (w + 2) * cin * cbytes
             + 2 * KSIZE * KSIZE * cin * cout * cbytes
             + 8 * cout * 4)                        # scale/shift/psum/pm2 blocks (tiny)
    per_row = (2 * cout * w * 4                     # pass-2 output block, double-buffered
               + 2 * w * cin * cbytes               # live tap slices
               + cout * w * 4)                      # f32 accumulator vregs
    cap_rows = max(1, (vmem_budget - fixed) // max(per_row, 1))
    if requested is not None:
        cands = [d for d in cands if d <= requested] or [cands[0]]
    fitting = [d for d in cands if d <= cap_rows]
    # TODO(synk): if nothing fits (production H*W*Cin on v7x), halo-tile the input
    #   instead of keeping the whole padded image resident.
    return fitting[-1] if fitting else cands[0]


def _make_kernels(tile_h, w_out, cin, cout):
    npix = tile_h * w_out

    def conv_tile(x_ref, w_ref):
        """3x3 conv of one row tile -> channel-major (Cout, tile_h*W) f32, in vregs."""
        row0 = pl.multiple_of(pl.program_id(1) * tile_h, tile_h)
        acc = None
        for kh in range(KSIZE):
            for kw in range(KSIZE):
                t = kh * KSIZE + kw
                # Tap read straight from the resident padded image (+1 row/col halo).
                tap = x_ref[0, pl.ds(row0 + kh, tile_h), pl.ds(kw, w_out), :]
                tap = tap.reshape(npix, cin)                 # leading-dim merge only
                w_tap = w_ref[:, t * cin:(t + 1) * cin]      # (Cout, Cin)
                # NT matmul -> (Cout, npix), f32 MXU accumulation.  The running sum
                # stays in vregs: no VMEM accumulator, no zero-fill store.
                d = lax.dot_general(w_tap, tap,
                                    dimension_numbers=(((1,), (1,)), ((), ())),
                                    preferred_element_type=jnp.float32)
                acc = d if acc is None else acc + d
        return acc

    def stats_kernel(x_ref, w_ref, psum_ref, pm2_ref):
        # Per-(image, row-tile) channel partials: sum + mean-centered sum of squares
        # (merged Chan/Welford-style in the wrapper -> no E[x^2]-E[x]^2 cancellation).
        acc = conv_tile(x_ref, w_ref)                        # (Cout, npix) f32
        s = jnp.sum(acc, axis=1, keepdims=True)              # (Cout, 1)
        centered = acc - s * (1.0 / npix)
        m2 = jnp.sum(centered * centered, axis=1, keepdims=True)
        psum_ref[...] = s.reshape(psum_ref.shape)
        pm2_ref[...] = m2.reshape(pm2_ref.shape)

    def bn_relu_kernel(x_ref, w_ref, scale_ref, shift_ref, o_ref):
        # Recompute the conv tile (cheaper than an f32 HBM round trip of the conv
        # intermediate), fuse BN affine + ReLU, store channel-major (lane-dense).
        acc = conv_tile(x_ref, w_ref)                        # (Cout, npix) f32
        y = jnp.maximum(acc * scale_ref[...] + shift_ref[...], 0.0)
        o_ref[...] = y.reshape(o_ref.shape).astype(o_ref.dtype)

    return stats_kernel, bn_relu_kernel


def conv_bn_relu(x_nchw, weight, gamma, beta, *, tile_h=None,
                 compute_dtype=jnp.bfloat16):
    """PyTorch-equivalent forward: ReLU(BatchNorm2d(Conv2d_3x3_s1_p1(x))).

    x_nchw: (N, Cin, H, W) f32; weight: (Cout, Cin, 3, 3); gamma/beta: (Cout,).
    Returns (N, Cout, H, W) f32.  BatchNorm normalizes with training-mode batch
    statistics (biased variance), matching nn.BatchNorm2d's forward in train().
    """
    n, cin, h, w = x_nchw.shape
    cout = weight.shape[0]

    cbytes = jnp.dtype(compute_dtype).itemsize
    vmem_limit = int(_vmem_capacity_bytes() * 0.85)          # generation-aware scoped limit
    tile_h = _pick_tile_h(h, w, cin, cout, cbytes,
                          vmem_budget=int(vmem_limit * 0.8), requested=tile_h)
    r_tiles = h // tile_h

    # Channels-last inside the kernel (channels feed the MXU contraction, pixels map to
    # lanes); 1-px zero halo added once in HBM; bf16 operands halve HBM reads and VMEM
    # residency (accumulation stays f32).  An NHWC end-to-end model would skip this
    # input transpose entirely.
    x_pad = jnp.pad(jnp.transpose(x_nchw, (0, 2, 3, 1)),
                    ((0, 0), (1, 1), (1, 1), (0, 0))).astype(compute_dtype)
    # Weight flattened to (Cout, kh*kw*Cin), matching the kernel's tap order.
    w_flat = jnp.transpose(weight, (0, 2, 3, 1)).reshape(
        cout, KSIZE * KSIZE * cin).astype(compute_dtype)

    stats_kernel, bn_relu_kernel = _make_kernels(tile_h, w, cin, cout)

    # Whole padded image per batch element; index_map constant along r -> fetched once
    # and kept resident while the row tiles iterate (halo comes from pl.ds slices).
    x_spec = pl.BlockSpec((1, h + 2, w + 2, cin), lambda b, r: (b, 0, 0, 0))
    w_spec = pl.BlockSpec((cout, KSIZE * KSIZE * cin), lambda b, r: (0, 0))
    stat_spec = pl.BlockSpec((1, 1, cout, 1), lambda b, r: (b, r, 0, 0))

    # Pass 1: conv + BN partial statistics (the conv intermediate never hits HBM).
    psum, pm2 = pl.pallas_call(
        stats_kernel,
        grid=(n, r_tiles),
        out_shape=(jax.ShapeDtypeStruct((n, r_tiles, cout, 1), jnp.float32),
                   jax.ShapeDtypeStruct((n, r_tiles, cout, 1), jnp.float32)),
        in_specs=[x_spec, w_spec],
        out_specs=(stat_spec, stat_spec),
        compiler_params=pltpu.CompilerParams(
            # batch axis uses both TensorCores; row axis stays "arbitrary" so the
            # per-image resident input is not refetched per row tile.
            dimension_semantics=("parallel", "arbitrary"),
            vmem_limit_bytes=vmem_limit),
    )(x_pad, w_flat)

    # Fold tiny per-tile partials into global batch statistics (stable group merge).
    npix_tile = jnp.float32(tile_h * w)
    count = jnp.float32(n * h * w)
    gsum = psum[..., 0]                                      # (N, r_tiles, Cout)
    gm2 = pm2[..., 0]
    mean = jnp.sum(gsum, axis=(0, 1)) / count
    gmean = gsum / npix_tile
    m2 = jnp.sum(gm2, axis=(0, 1)) + npix_tile * jnp.sum((gmean - mean) ** 2, axis=(0, 1))
    var = m2 / count                                         # biased, as in BN forward
    inv_std = lax.rsqrt(var + EPS)
    scale = (gamma * inv_std).reshape(cout, 1).astype(jnp.float32)
    shift = (beta - mean * gamma * inv_std).reshape(cout, 1).astype(jnp.float32)

    # Pass 2: recompute conv tile + fused scale/shift + ReLU.  Output is channel-major
    # (N, Cout, H*W): minor dim tile_h*W (>=128) -> unmasked lane-dense stores even for
    # Cout < 128, and the result is already NCHW (no output-transpose HBM pass).
    out_flat = pl.pallas_call(
        bn_relu_kernel,
        grid=(n, r_tiles),
        out_shape=jax.ShapeDtypeStruct((n, cout, h * w), jnp.float32),
        in_specs=[x_spec, w_spec,
                  pl.BlockSpec((cout, 1), lambda b, r: (0, 0)),
                  pl.BlockSpec((cout, 1), lambda b, r: (0, 0))],
        out_specs=pl.BlockSpec((1, cout, tile_h * w), lambda b, r: (b, 0, r)),
        compiler_params=pltpu.CompilerParams(
            dimension_semantics=("parallel", "arbitrary"),
            vmem_limit_bytes=vmem_limit),
    )(x_pad, w_flat, scale, shift)

    return out_flat.reshape(n, cout, h, w)


# ---------------------------------------------------------------------------
# Pure-JAX reference for validation
# ---------------------------------------------------------------------------
def _reference(x_nchw, weight, gamma, beta):
    out = lax.conv_general_dilated(
        x_nchw, weight, window_strides=(1, 1), padding=((1, 1), (1, 1)),
        dimension_numbers=("NCHW", "OIHW", "NCHW"))
    mean = jnp.mean(out, axis=(0, 2, 3), keepdims=True)
    var = jnp.mean((out - mean) ** 2, axis=(0, 2, 3), keepdims=True)
    y = (out - mean) * lax.rsqrt(var + EPS)
    y = y * gamma.reshape(1, -1, 1, 1) + beta.reshape(1, -1, 1, 1)
    return jnp.maximum(y, 0.0)


if __name__ == "__main__":
    key = jax.random.PRNGKey(0)
    k_x, k_w, k_g, k_b = jax.random.split(key, 4)

    N, Cin, Cout, H, W = 2, 4, 8, 16, 16

    x = jax.random.normal(k_x, (N, Cin, H, W), dtype=jnp.float32)
    weight = jax.random.normal(k_w, (Cout, Cin, KSIZE, KSIZE), dtype=jnp.float32) * 0.1
    gamma = 1.0 + 0.1 * jax.random.normal(k_g, (Cout,), dtype=jnp.float32)
    beta = 0.1 * jax.random.normal(k_b, (Cout,), dtype=jnp.float32)

    ref = jax.block_until_ready(_reference(x, weight, gamma, beta))

    # f32 path checks algorithmic exactness (tight tolerance); bf16 is the default perf
    # config (HBM reads halved, f32 accumulation) with an operand-rounding-limited
    # tolerance.  tile_h=8 exercises the multi-row-tile cross-tile BN reduction,
    # tile_h=None lets the generation-aware heuristic pick the largest legal tile.
    cases = ((8, jnp.float32, 2e-3), (None, jnp.float32, 2e-3),
             (8, jnp.bfloat16, 5e-2), (None, jnp.bfloat16, 5e-2))
    for th, cdt, tol in cases:
        out = jax.block_until_ready(
            conv_bn_relu(x, weight, gamma, beta, tile_h=th, compute_dtype=cdt))
        assert out.shape == (N, Cout, H, W)
        err = float(jnp.max(jnp.abs(out - ref)))
        assert err < tol, f"max abs err {err} (tile_h={th}, dtype={cdt})"

    print("KERNEL_OK")
</pallas_src>

<mosaic_0001>
module attributes {stable_mosaic.version = 11 : i64} {
  func.func @stats_kernel(%arg0: i32, %arg1: i32, %arg2: memref<1x18x18x4xf32, #tpu.memory_space<vmem>>, %arg3: memref<8x36xf32, #tpu.memory_space<vmem>>, %arg4: memref<1x1x8x1xf32, #tpu.memory_space<vmem>>, %arg5: memref<1x1x8x1xf32, #tpu.memory_space<vmem>>) attributes {dimension_semantics = [#tpu.dimension_semantics<parallel>, #tpu.dimension_semantics<arbitrary>], iteration_bounds = array<i64: 2, 2>, scalar_prefetch = 0 : i64, scratch_operands = 0 : i64, tpu.core_type = #tpu.core_type<tc>, window_params = [{transform_indices = @transform_0, window_bounds = array<i64: 1, 18, 18, 4>}, {pipeline_mode = #tpu.pipeline_mode<synchronous>, transform_indices = @transform_1, window_bounds = array<i64: 8, 36>}, {transform_indices = @transform_2, window_bounds = array<i64: 1, 1, 8, 1>}, {transform_indices = @transform_3, window_bounds = array<i64: 1, 1, 8, 1>}]} {
    %c8_i32 = arith.constant 8 : i32
    %0 = arith.muli %arg1, %c8_i32 : i32
    %1 = tpu.assume_multiple %0, 8 : i32
    %c0_i32 = arith.constant 0 : i32
    %2 = arith.addi %1, %c0_i32 : i32
    %c0 = arith.constant 0 : index
    %3 = arith.index_cast %2 : i32 to index
    %c0_0 = arith.constant 0 : index
    %c0_1 = arith.constant 0 : index
    %4 = vector.load %arg2[%c0, %3, %c0_0, %c0_1] : memref<1x18x18x4xf32, #tpu.memory_space<vmem>>, vector<1x8x16x4xf32>
    %5 = vector.shape_cast %4 : vector<1x8x16x4xf32> to vector<8x16x4xf32>
    %6 = vector.shape_cast %5 : vector<8x16x4xf32> to vector<128x4xf32>
    %c0_2 = arith.constant 0 : index
    %c0_3 = arith.constant 0 : index
    %7 = vector.load %arg3[%c0_2, %c0_3] : memref<8x36xf32, #tpu.memory_space<vmem>>, vector<8x4xf32>
    %cst = arith.constant dense<0.000000e+00> : vector<8x128xf32>
    %8 = tpu.matmul %7, %6, %cst {dimension_numbers = #tpu.dot_dimension_numbers<[1], [1], [0], [0], [0, 0, 1, 0], [], []>} : vector<8x4xf32>, vector<128x4xf32>, vector<8x128xf32> -> vector<8x128xf32>
    %c0_i32_4 = arith.constant 0 : i32
    %9 = arith.addi %1, %c0_i32_4 : i32
    %c0_5 = arith.constant 0 : index
    %10 = arith.index_cast %9 : i32 to index
    %c1 = arith.constant 1 : index
    %c0_6 = arith.constant 0 : index
    %11 = vector.load %arg2[%c0_5, %10, %c1, %c0_6] : memref<1x18x18x4xf32, #tpu.memory_space<vmem>>, vector<1x8x16x4xf32>
    %12 = vector.shape_cast %11 : vector<1x8x16x4xf32> to vector<8x16x4xf32>
    %13 = vector.shape_cast %12 : vector<8x16x4xf32> to vector<128x4xf32>
    %c0_7 = arith.constant 0 : index
    %c4 = arith.constant 4 : index
    %14 = vector.load %arg3[%c0_7, %c4] : memref<8x36xf32, #tpu.memory_space<vmem>>, vector<8x4xf32>
    %cst_8 = arith.constant dense<0.000000e+00> : vector<8x128xf32>
    %15 = tpu.matmul %14, %13, %cst_8 {dimension_numbers = #tpu.dot_dimension_numbers<[1], [1], [0], [0], [0, 0, 1, 0], [], []>} : vector<8x4xf32>, vector<128x4xf32>, vector<8x128xf32> -> vector<8x128xf32>
    %16 = arith.addf %8, %15 : vector<8x128xf32>
    %c0_i32_9 = arith.constant 0 : i32
    %17 = arith.addi %1, %c0_i32_9 : i32
    %c0_10 = arith.constant 0 : index
    %18 = arith.index_cast %17 : i32 to index
    %c2 = arith.constant 2 : index
    %c0_11 = arith.constant 0 : index
    %19 = vector.load %arg2[%c0_10, %18, %c2, %c0_11] : memref<1x18x18x4xf32, #tpu.memory_space<vmem>>, vector<1x8x16x4xf32>
    %20 = vector.shape_cast %19 : vector<1x8x16x4xf32> to vector<8x16x4xf32>
    %21 = vector.shape_cast %20 : vector<8x16x4xf32> to vector<128x4xf32>
    %c0_12 = arith.constant 0 : index
    %c8 = arith.constant 8 : index
    %22 = vector.load %arg3[%c0_12, %c8] : memref<8x36xf32, #tpu.memory_space<vmem>>, vector<8x4xf32>
    %cst_13 = arith.constant dense<0.000000e+00> : vector<8x128xf32>
    %23 = tpu.matmul %22, %21, %cst_13 {dimension_numbers = #tpu.dot_dimension_numbers<[1], [1], [0], [0], [0, 0, 1, 0], [], []>} : vector<8x4xf32>, vector<128x4xf32>, vector<8x128xf32> -> vector<8x128xf32>
    %24 = arith.addf %16, %23 : vector<8x128xf32>
    %c1_i32 = arith.constant 1 : i32
    %25 = arith.addi %1, %c1_i32 : i32
    %c0_14 = arith.constant 0 : index
    %26 = arith.index_cast %25 : i32 to index
    %c0_15 = arith.constant 0 : index
    %c0_16 = arith.constant 0 : index
    %27 = vector.load %arg2[%c0_14, %26, %c0_15, %c0_16] : memref<1x18x18x4xf32, #tpu.memory_space<vmem>>, vector<1x8x16x4xf32>
    %28 = vector.shape_cast %27 : vector<1x8x16x4xf32> to vector<8x16x4xf32>
    %29 = vector.shape_cast %28 : vector<8x16x4xf32> to vector<128x4xf32>
    %c0_17 = arith.constant 0 : index
    %c12 = arith.constant 12 : index
    %30 = vector.load %arg3[%c0_17, %c12] : memref<8x36xf32, #tpu.memory_space<vmem>>, vector<8x4xf32>
    %cst_18 = arith.constant dense<0.000000e+00> : vector<8x128xf32>
    %31 = tpu.matmul %30, %29, %cst_18 {dimension_numbers = #tpu.dot_dimension_numbers<[1], [1], [0], [0], [0, 0, 1, 0], [], []>} : vector<8x4xf32>, vector<128x4xf32>, vector<8x128xf32> -> vector<8x128xf32>
    %32 = arith.addf %24, %31 : vector<8x128xf32>
    %c1_i32_19 = arith.constant 1 : i32
    %33 = arith.addi %1, %c1_i32_19 : i32
    %c0_20 = arith.constant 0 : index
    %34 = arith.index_cast %33 : i32 to index
    %c1_21 = arith.constant 1 : index
    %c0_22 = arith.constant 0 : index
    %35 = vector.load %arg2[%c0_20, %34, %c1_21, %c0_22] : memref<1x18x18x4xf32, #tpu.memory_space<vmem>>, vector<1x8x16x4xf32>
    %36 = vector.shape_cast %35 : vector<1x8x16x4xf32> to vector<8x16x4xf32>
    %37 = vector.shape_cast %36 : vector<8x16x4xf32> to vector<128x4xf32>
    %c0_23 = arith.constant 0 : index
    %c16 = arith.constant 16 : index
    %38 = vector.load %arg3[%c0_23, %c16] : memref<8x36xf32, #tpu.memory_space<vmem>>, vector<8x4xf32>
    %cst_24 = arith.constant dense<0.000000e+00> : vector<8x128xf32>
    %39 = tpu.matmul %38, %37, %cst_24 {dimension_numbers = #tpu.dot_dimension_numbers<[1], [1], [0], [0], [0, 0, 1, 0], [], []>} : vector<8x4xf32>, vector<128x4xf32>, vector<8x128xf32> -> vector<8x128xf32>
    %40 = arith.addf %32, %39 : vector<8x128xf32>
    %c1_i32_25 = arith.constant 1 : i32
    %41 = arith.addi %1, %c1_i32_25 : i32
    %c0_26 = arith.constant 0 : index
    %42 = arith.index_cast %41 : i32 to index
    %c2_27 = arith.constant 2 : index
    %c0_28 = arith.constant 0 : index
    %43 = vector.load %arg2[%c0_26, %42, %c2_27, %c0_28] : memref<1x18x18x4xf32, #tpu.memory_space<vmem>>, vector<1x8x16x4xf32>
    %44 = vector.shape_cast %43 : vector<1x8x16x4xf32> to vector<8x16x4xf32>
    %45 = vector.shape_cast %44 : vector<8x16x4xf32> to vector<128x4xf32>
    %c0_29 = arith.constant 0 : index
    %c20 = arith.constant 20 : index
    %46 = vector.load %arg3[%c0_29, %c20] : memref<8x36xf32, #tpu.memory_space<vmem>>, vector<8x4xf32>
    %cst_30 = arith.constant dense<0.000000e+00> : vector<8x128xf32>
    %47 = tpu.matmul %46, %45, %cst_30 {dimension_numbers = #tpu.dot_dimension_numbers<[1], [1], [0], [0], [0, 0, 1, 0], [], []>} : vector<8x4xf32>, vector<128x4xf32>, vector<8x128xf32> -> vector<8x128xf32>
    %48 = arith.addf %40, %47 : vector<8x128xf32>
    %c2_i32 = arith.constant 2 : i32
    %49 = arith.addi %1, %c2_i32 : i32
    %c0_31 = arith.constant 0 : index
    %50 = arith.index_cast %49 : i32 to index
    %c0_32 = arith.constant 0 : index
    %c0_33 = arith.constant 0 : index
    %51 = vector.load %arg2[%c0_31, %50, %c0_32, %c0_33] : memref<1x18x18x4xf32, #tpu.memory_space<vmem>>, vector<1x8x16x4xf32>
    %52 = vector.shape_cast %51 : vector<1x8x16x4xf32> to vector<8x16x4xf32>
    %53 = vector.shape_cast %52 : vector<8x16x4xf32> to vector<128x4xf32>
    %c0_34 = arith.constant 0 : index
    %c24 = arith.constant 24 : index
    %54 = vector.load %arg3[%c0_34, %c24] : memref<8x36xf32, #tpu.memory_space<vmem>>, vector<8x4xf32>
    %cst_35 = arith.constant dense<0.000000e+00> : vector<8x128xf32>
    %55 = tpu.matmul %54, %53, %cst_35 {dimension_numbers = #tpu.dot_dimension_numbers<[1], [1], [0], [0], [0, 0, 1, 0], [], []>} : vector<8x4xf32>, vector<128x4xf32>, vector<8x128xf32> -> vector<8x128xf32>
    %56 = arith.addf %48, %55 : vector<8x128xf32>
    %c2_i32_36 = arith.constant 2 : i32
    %57 = arith.addi %1, %c2_i32_36 : i32
    %c0_37 = arith.constant 0 : index
    %58 = arith.index_cast %57 : i32 to index
    %c1_38 = arith.constant 1 : index
    %c0_39 = arith.constant 0 : index
    %59 = vector.load %arg2[%c0_37, %58, %c1_38, %c0_39] : memref<1x18x18x4xf32, #tpu.memory_space<vmem>>, vector<1x8x16x4xf32>
    %60 = vector.shape_cast %59 : vector<1x8x16x4xf32> to vector<8x16x4xf32>
    %61 = vector.shape_cast %60 : vector<8x16x4xf32> to vector<128x4xf32>
    %c0_40 = arith.constant 0 : index
    %c28 = arith.constant 28 : index
    %62 = vector.load %arg3[%c0_40, %c28] : memref<8x36xf32, #tpu.memory_space<vmem>>, vector<8x4xf32>
    %cst_41 = arith.constant dense<0.000000e+00> : vector<8x128xf32>
    %63 = tpu.matmul %62, %61, %cst_41 {dimension_numbers = #tpu.dot_dimension_numbers<[1], [1], [0], [0], [0, 0, 1, 0], [], []>} : vector<8x4xf32>, vector<128x4xf32>, vector<8x128xf32> -> vector<8x128xf32>
    %64 = arith.addf %56, %63 : vector<8x128xf32>
    %c2_i32_42 = arith.constant 2 : i32
    %65 = arith.addi %1, %c2_i32_42 : i32
    %c0_43 = arith.constant 0 : index
    %66 = arith.index_cast %65 : i32 to index
    %c2_44 = arith.constant 2 : index
    %c0_45 = arith.constant 0 : index
    %67 = vector.load %arg2[%c0_43, %66, %c2_44, %c0_45] : memref<1x18x18x4xf32, #tpu.memory_space<vmem>>, vector<1x8x16x4xf32>
    %68 = vector.shape_cast %67 : vector<1x8x16x4xf32> to vector<8x16x4xf32>
    %69 = vector.shape_cast %68 : vector<8x16x4xf32> to vector<128x4xf32>
    %c0_46 = arith.constant 0 : index
    %c32 = arith.constant 32 : index
    %70 = vector.load %arg3[%c0_46, %c32] : memref<8x36xf32, #tpu.memory_space<vmem>>, vector<8x4xf32>
    %cst_47 = arith.constant dense<0.000000e+00> : vector<8x128xf32>
    %71 = tpu.matmul %70, %69, %cst_47 {dimension_numbers = #tpu.dot_dimension_numbers<[1], [1], [0], [0], [0, 0, 1, 0], [], []>} : vector<8x4xf32>, vector<128x4xf32>, vector<8x128xf32> -> vector<8x128xf32>
    %72 = arith.addf %64, %71 : vector<8x128xf32>
    %cst_48 = arith.constant dense<0.000000e+00> : vector<8xf32>
    %73 = vector.multi_reduction <add>, %72, %cst_48 [1] : vector<8x128xf32> to vector<8xf32>
    %74 = vector.shape_cast %73 : vector<8xf32> to vector<8x1xf32>
    %cst_49 = arith.constant 7.812500e-03 : f32
    %75 = vector.broadcast %cst_49 : f32 to vector<8x1xf32>
    %76 = arith.mulf %74, %75 : vector<8x1xf32>
    %77 = vector.broadcast %76 : vector<8x1xf32> to vector<8x128xf32>
    %78 = arith.subf %72, %77 : vector<8x128xf32>
    %79 = arith.mulf %78, %78 : vector<8x128xf32>
    %cst_50 = arith.constant dense<0.000000e+00> : vector<8xf32>
    %80 = vector.multi_reduction <add>, %79, %cst_50 [1] : vector<8x128xf32> to vector<8xf32>
    %81 = vector.shape_cast %80 : vector<8xf32> to vector<8x1xf32>
    %82 = vector.shape_cast %74 : vector<8x1xf32> to vector<1x1x8x1xf32>
    %c0_51 = arith.constant 0 : index
    %c0_52 = arith.constant 0 : index
    %c0_53 = arith.constant 0 : index
    %c0_54 = arith.constant 0 : index
    %83 = vector.load %arg4[%c0_51, %c0_52, %c0_53, %c0_54] : memref<1x1x8x1xf32, #tpu.memory_space<vmem>>, vector<1x1x8x1xf32>
    tpu.vector_store %arg4[%c0_51, %c0_52, %c0_53, %c0_54], %82 {strides = array<i32>} : memref<1x1x8x1xf32, #tpu.memory_space<vmem>>, vector<1x1x8x1xf32>,
    %84 = vector.shape_cast %81 : vector<8x1xf32> to vector<1x1x8x1xf32>
    %c0_55 = arith.constant 0 : index
    %c0_56 = arith.constant 0 : index
    %c0_57 = arith.constant 0 : index
    %c0_58 = arith.constant 0 : index
    %85 = vector.load %arg5[%c0_55, %c0_56, %c0_57, %c0_58] : memref<1x1x8x1xf32, #tpu.memory_space<vmem>>, vector<1x1x8x1xf32>
    tpu.vector_store %arg5[%c0_55, %c0_56, %c0_57, %c0_58], %84 {strides = array<i32>} : memref<1x1x8x1xf32, #tpu.memory_space<vmem>>, vector<1x1x8x1xf32>,
    return
  }
  func.func @transform_0(%arg0: i32, %arg1: i32) -> (i32, i32, i32, i32) {
    %c0_i32 = arith.constant 0 : i32
    %c0_i32_0 = arith.constant 0 : i32
    %c0_i32_1 = arith.constant 0 : i32
    %c0_i32_2 = arith.constant 0 : i32
    return %arg0, %c0_i32, %c0_i32_0, %c0_i32_1 : i32, i32, i32, i32
  }
  func.func @transform_1(%arg0: i32, %arg1: i32) -> (i32, i32) {
    %c0_i32 = arith.constant 0 : i32
    %c0_i32_0 = arith.constant 0 : i32
    %c0_i32_1 = arith.constant 0 : i32
    return %c0_i32, %c0_i32_0 : i32, i32
  }
  func.func @transform_2(%arg0: i32, %arg1: i32) -> (i32, i32, i32, i32) {
    %c0_i32 = arith.constant 0 : i32
    %c0_i32_0 = arith.constant 0 : i32
    %c0_i32_1 = arith.constant 0 : i32
    return %arg0, %arg1, %c0_i32, %c0_i32_0 : i32, i32, i32, i32
  }
  func.func @transform_3(%arg0: i32, %arg1: i32) -> (i32, i32, i32, i32) {
    %c0_i32 = arith.constant 0 : i32
    %c0_i32_0 = arith.constant 0 : i32
    %c0_i32_1 = arith.constant 0 : i32
    return %arg0, %arg1, %c0_i32, %c0_i32_0 : i32, i32, i32, i32
  }
}

</mosaic_0001>

<bundles_post_ra>
// kernel: tpu_custom_call.1
= control target key start
LH: loop header
LB: loop body
LE: loop exit
PB: predicated region body
PF: predicated region fallthrough
CT: control target
= control target key end

     0   :  { %s2474_s12 = smov 0   ;;  %s2476_s13 = smov 0   ;;  %s3140_s0 = inlined_call_operand.vmem [shape: f32[2,18,18,4], index: 0, kind: input, shape index: {}]   ;;  %s3141_s1 = inlined_call_operand.vmem [shape: f32[8,36], index: 1, kind: input, shape index: {}]   ;;  %s3142_s2 = inlined_call_operand.vmem [shape: f32[2,2,8,1], index: 2, kind: output, shape index: {0}]   ;;  %s3143_s3 = inlined_call_operand.vmem [shape: f32[2,2,8,1], index: 3, kind: output, shape index: {1}]  }
   0x1   :  { %s2478_s14 = smov 0   ;;  %s2480_s15 = smov 0  }
   0x2   :  { %s2482_s16 = smov 0  }
   0x3 LB: > { %s23_s17 = sadd.s32 1, %s2434_s14  ;;  %s26_s18 = sadd.s32 1, %s2438_s15  ;;  %s2442_s16 = sphi %s2482_s16, %s14_s16   ;;  %s2438_s15 = sphi %s2480_s15, %s3147_s15   ;;  %s2434_s14 = sphi %s2478_s14, %s3146_s14   ;;  %s2430_s13 = sphi %s2476_s13, %s3145_s13   ;;  %s2426_s12 = sphi %s2474_s12, %s3144_s12  }
   0x4   : > { %p24_p0 = scmp.ge.s32.totalorder %s23_s17, 2  ;;  %p1622_p1 = scmp.ge.s32.totalorder %s2442_s16, 1 }
   0x5   : > { %p156_p2 = scmp.lt.s32.totalorder %s2442_s16, 5 }
   0x6   : > { %s3149_s17 = smov (%p24_p0, %s23_s17), 0  ;;  %s3151_s18 = smov (!%p24_p0, %s26_s18), %s2438_s15 }
   0x7   : > { %p157_p3 = pnand %p1622_p1, %p156_p2  ;;  %p28_p4 = scmp.ge.s32.totalorder %s3151_s18, 2 }
   0x8   : > { %p191_p5 = scmp.lt.s32.totalorder (!%p157_p3), %s2430_s13, 1  ;;  %s2444_s21 = smov (!%p157_p3), 124  }
   0x9   : > { %s3153_s18 = smov (%p28_p4, %s3151_s18), 0  ;;  %160 = sbr.rel (%p157_p3) target bundleno = 864 (0x360), region = 28 }
   0xa   : > { %s1629_s22 = smul.u32 (!%p157_p3), 192, %s2426_s12  ;;  %s2447_s24 = smov (!%p157_p3), 116  }
   0xb   : > { %s2448_s25 = smov (!%p157_p3), 120   ;;  %s2449_s30 = smov (!%p157_p3), 112  }
   0xc   : > { %s2450_s4 = smov (!%p157_p3), 108   ;;  %s2451_s5 = smov (!%p157_p3), 104  }
   0xd   : > { %s2452_s6 = smov (!%p157_p3), 100   ;;  %s2453_s7 = smov (!%p157_p3), 96  }
   0xe   : > { %v2509_v0 = vld [vmem:[%s3141_s1] sm:$0xff]  ;;  %v2445_v1 = vmov 0.0   ;;  %s3155_s13 = smov (!%p191_p5, %s2430_s13), 1  ;;  %vm2446_vm0 = vmmov 0   ;;  %vm251_vm1 = vcmask 31744   ;;  %p198_p6 = scmp.lt.s32.totalorder %s2426_s12, 1 }
   0xf   : > { %249 = vrot.lane.b32.xlu0 %v2509_v0, %s2444_s21  ;;  %2038 = vmatprep.subr.mxu0 %v2445_v1  ;;  %s2353_s23 = smul.u32 432, %s3155_s13  ;;  %s1624_s8 = sshll.u32 %s3155_s13, 1  ;;  %vm1478_vm2 = vcmask 7168  }
  0x10   : > { %2073 = vmatprep.subr.mxu1 %v2445_v1  ;;  %2070 = vmatprep.mubr.msk.f32.mxu0 %vm2446_vm0, %v2445_v1  ;;  %s3157_s12 = smov (!%p198_p6, %s2426_s12), 1 }
  0x11   : > { %2105 = vmatprep.mubr.msk.f32.mxu1 %vm2446_vm0, %v2445_v1  ;;  %650 = vrot.lane.b32.xlu1 %v2509_v0, %s2447_s24  ;;  %s195_s28 = scalar_lea.vmem %s3140_s0, %s2353_s23  ;;  %s201_s9 = sadd.s32 %s1624_s8, %s3157_s12 }
  0x12   : > { %s2527_s29 = scalar_lea.vmem %s195_s28, %s1629_s22  ;;  %s1625_s10 = sshll.u32 %s201_s9, 3 }
  0x13   : > { %508 = vrot.lane.b32.xlu0 %v2509_v0, %s2448_s25  ;;  %v2530_v2 = vld [vmem:[%s2527_s29 + $0xb1] sm:$0xff]  ;;  %v2542_v4 = vld [vmem:[%s2527_s29 + $0xa9] sm:$0xff]  ;;  %v2555_v6 = vld [vmem:[%s2527_s29 + $0x99] sm:$0xff]  ;;  %s203_s20 = scalar_lea.vmem %s3142_s2, %s1625_s10  ;;  %s211_s23 = scalar_lea.vmem %s3143_s3, %s1625_s10 }
  0x14   : > { %v2533_v3 = vld [vmem:[%s2527_s29 + $0xb0] sm:$0xff]  ;;  %2039 = vmatpush3.xpose.msk.msra.mxu0 %vm251_vm1, %v2530_v2  ;;  %v2546_v5 = vld [vmem:[%s2527_s29 + $0xa8] sm:$0xff]  ;;  %v2559_v7 = vld [vmem:[%s2527_s29 + $0x98] sm:$0xff] }
  0x15   : > { %789 = vrot.lane.b32.xlu1 %v2509_v0, %s2449_s30  ;;  %2074 = vmatpush3.xpose.msk.msra.mxu1 %vm251_vm1, %v2533_v3  ;;  %v2567_v8 = vld [vmem:[%s2527_s29 + $0x91] sm:$0xff]  ;;  %v2579_v10 = vld [vmem:[%s2527_s29 + $0x81] sm:$0xff]  ;;  %v2591_v12 = vld [vmem:[%s2527_s29 + $0x79] sm:$0xff] }
  0x16   : > { %2040 = vmatprep.subr.mxu0 %v2445_v1  ;;  %2075 = vmatprep.subr.mxu1 %v2445_v1  ;;  %v2571_v9 = vld [vmem:[%s2527_s29 + $0x90] sm:$0xff]  ;;  %v2583_v11 = vld [vmem:[%s2527_s29 + $0x80] sm:$0xff]  ;;  %v2595_v13 = vld [vmem:[%s2527_s29 + $0x78] sm:$0xff] }
  0x17   : > { %928 = vrot.lane.b32.xlu0 %v2509_v0, %s2450_s4  ;;  %v2603_v14 = vld [vmem:[%s2527_s29 + $0x69] sm:$0xff]  ;;  %v2615_v16 = vld [vmem:[%s2527_s29 + $0x61] sm:$0xff]  ;;  %v2627_v18 = vld [vmem:[%s2527_s29 + $0x51] sm:$0xff] }
  0x18   : > { %2041 = vmatpush3.xpose.msk.msra.mxu0 %vm251_vm1, %v2542_v4  ;;  %v2607_v15 = vld [vmem:[%s2527_s29 + $0x68] sm:$0xff]  ;;  %v2619_v17 = vld [vmem:[%s2527_s29 + $0x60] sm:$0xff]  ;;  %v2631_v19 = vld [vmem:[%s2527_s29 + $0x50] sm:$0xff] }
  0x19   : > { %2076 = vmatpush3.xpose.msk.msra.mxu1 %vm251_vm1, %v2546_v5  ;;  %2042 = vmatprep.subr.mxu0 %v2445_v1  ;;  %v2639_v20 = vld [vmem:[%s2527_s29 + $0x49] sm:$0xff]  ;;  %v2651_v22 = vld [vmem:[%s2527_s29 + $0x39] sm:$0xff]  ;;  %v2663_v24 = vld [vmem:[%s2527_s29 + $0x31] sm:$0xff] }
  0x1a   : > { %2077 = vmatprep.subr.mxu1 %v2445_v1  ;;  %v2643_v21 = vld [vmem:[%s2527_s29 + $0x48] sm:$0xff]  ;;  %v2655_v23 = vld [vmem:[%s2527_s29 + $0x38] sm:$0xff]  ;;  %v2667_v25 = vld [vmem:[%s2527_s29 + $0x30] sm:$0xff]  ;;  %1070 = vrot.lane.b32.xlu1 %v2509_v0, %s2451_s5 }
  0x1b   : > { %v2675_v26 = vld [vmem:[%s2527_s29 + $0x21] sm:$0xff]  ;;  %v2687_v28 = vld [vmem:[%s2527_s29 + $0x19] sm:$0xff]  ;;  %v233_v30 = vld [vmem:[%s2527_s29 + $0x9] sm:$0xff]  ;;  %1209 = vrot.lane.b32.xlu0 %v2509_v0, %s2452_s6 }
  0x1c   : > { %2043 = vmatpush3.xpose.msk.msra.mxu0 %vm251_vm1, %v2555_v6  ;;  %v2679_v27 = vld [vmem:[%s2527_s29 + $0x20] sm:$0xff]  ;;  %v2691_v29 = vld [vmem:[%s2527_s29 + $0x18] sm:$0xff]  ;;  %v216_v31 = vld [vmem:[%s2527_s29 + $0x8] sm:$0xff] }
  0x1d   : > { %2078 = vmatpush3.xpose.msk.msra.mxu1 %vm251_vm1, %v2559_v7  ;;  %2044 = vmatprep.subr.mxu0 %v2445_v1  ;;  %v232_v32 = vld [vmem:[%s2527_s29 + $0x1] sm:$0xff]  ;;  %v2756_v36 = vld [vmem:[%s2527_s29 + $0xb2] sm:$0xff]  ;;  %v2766_v38 = vld [vmem:[%s2527_s29 + $0xaa] sm:$0xff] }
  0x1e   : > { %2079 = vmatprep.subr.mxu1 %v2445_v1  ;;  %v215_v33 = vld [vmem:[%s2527_s29] sm:$0xff]  ;;  %v2714_v34 = vld [vmem:[%s2527_s29 + $0xc8] sm:$0xff]  ;;  %v2786_v40 = vld [vmem:[%s2527_s29 + $0x92] sm:$0xff]  ;;  %1348 = vrot.lane.b32.xlu1 %v2509_v0, %s2453_s7 }
  0x1f   : > { %v2724_v35 = vld [vmem:[%s2527_s29 + $0xc0] sm:$0xff]  ;;  %v2809_v44 = vld [vmem:[%s2527_s29 + $0xca] sm:$0xff]  ;;  %v2841_v48 = vld [vmem:[%s2527_s29 + $0x52] sm:$0xff] }
  0x20   : > { %2045 = vmatpush3.xpose.msk.msra.mxu0 %vm251_vm1, %v2567_v8  ;;  %v2777_v39 = vld [vmem:[%s2527_s29 + $0x9a] sm:$0xff]  ;;  %v2796_v41 = vld [vmem:[%s2527_s29 + $0x82] sm:$0xff]  ;;  %v2818_v45 = vld [vmem:[%s2527_s29 + $0x6a] sm:$0xff] }
  0x21   : > { %2080 = vmatpush3.xpose.msk.msra.mxu1 %vm251_vm1, %v2571_v9  ;;  %2046 = vmatprep.subr.mxu0 %v2445_v1  ;;  %v2805_v43 = vld [vmem:[%s2527_s29 + $0x7a] sm:$0xff]  ;;  %v2822_v46 = vld [vmem:[%s2527_s29 + $0xc2] sm:$0xff]  ;;  %v2850_v49 = vld [vmem:[%s2527_s29 + $0x4a] sm:$0xff] }
  0x22   : > { %2081 = vmatprep.subr.mxu1 %v2445_v1  ;;  %v2832_v47 = vld [vmem:[%s2527_s29 + $0x62] sm:$0xff]  ;;  %v2859_v50 = vld [vmem:[%s2527_s29 + $0x3a] sm:$0xff]  ;;  %v2868_v51 = vld [vmem:[%s2527_s29 + $0x32] sm:$0xff] }
  0x23   : > { %v495_v52 = vld [vmem:[%s2527_s29 + $0x22] sm:$0xff]  ;;  %v494_v53 = vld [vmem:[%s2527_s29 + $0x1a] sm:$0xff]  ;;  %v493_v54 = vld [vmem:[%s2527_s29 + $0xa] sm:$0xff] }
  0x24   : > { %2047 = vmatpush3.xpose.msk.msra.mxu0 %vm251_vm1, %v2579_v10  ;;  %v492_v55 = vld [vmem:[%s2527_s29 + $0x2] sm:$0xff]  ;;  %v1831_v61 = vld [vmem:[%s2527_s29 + $0xd9] sm:$0xff] }
  0x25   : > { %2082 = vmatpush3.xpose.msk.msra.mxu1 %vm251_vm1, %v2583_v11  ;;  %2048 = vmatprep.subr.mxu0 %v2445_v1  ;;  %v1731_v57 = vld [vmem:[%s2527_s29 + $0xc9] sm:$0xff]  ;;  %v1730_v58 = vld [vmem:[%s2527_s29 + $0xc1] sm:$0xff] }
  0x26   : > { %2083 = vmatprep.subr.mxu1 %v2445_v1  ;;  %v1832_v60 = vld [vmem:[%s2527_s29 + $0xe1] sm:$0xff] }
  0x27   : > { %v1799_v63 = vld [vmem:[%s2527_s29 + $0xe0] sm:$0xff] }
  0x28   : > { %2049 = vmatpush3.xpose.msk.msra.mxu0 %vm251_vm1, %v2591_v12 }
  0x29   : > { %2084 = vmatpush3.xpose.msk.msra.mxu1 %vm251_vm1, %v2595_v13  ;;  %2050 = vmatprep.subr.mxu0 %v2445_v1 }
  0x2a   : > { %2085 = vmatprep.subr.mxu1 %v2445_v1 }
  0x2c   : > { %2051 = vmatpush3.xpose.msk.msra.mxu0 %vm251_vm1, %v2603_v14 }
  0x2d   : > { %2086 = vmatpush3.xpose.msk.msra.mxu1 %vm251_vm1, %v2607_v15  ;;  %2052 = vmatprep.subr.mxu0 %v2445_v1 }
  0x2e   : > { %2087 = vmatprep.subr.mxu1 %v2445_v1 }
  0x30   : > { %2053 = vmatpush3.xpose.msk.msra.mxu0 %vm251_vm1, %v2615_v16 }
  0x31   : > { %2088 = vmatpush3.xpose.msk.msra.mxu1 %vm251_vm1, %v2619_v17  ;;  %2054 = vmatprep.subr.mxu0 %v2445_v1 }
  0x32   : > { %2089 = vmatprep.subr.mxu1 %v2445_v1 }
  0x34   : > { %2055 = vmatpush3.xpose.msk.msra.mxu0 %vm251_vm1, %v2627_v18 }
  0x35   : > { %2090 = vmatpush3.xpose.msk.msra.mxu1 %vm251_vm1, %v2631_v19  ;;  %2056 = vmatprep.subr.mxu0 %v2445_v1 }
  0x36   : > { %2091 = vmatprep.subr.mxu1 %v2445_v1 }
  0x38   : > { %2057 = vmatpush3.xpose.msk.msra.mxu0 %vm251_vm1, %v2639_v20 }
  0x39   : > { %2092 = vmatpush3.xpose.msk.msra.mxu1 %vm251_vm1, %v2643_v21  ;;  %2058 = vmatprep.subr.mxu0 %v2445_v1 }
  0x3a   : > { %2093 = vmatprep.subr.mxu1 %v2445_v1 }
  0x3c   : > { %2059 = vmatpush3.xpose.msk.msra.mxu0 %vm251_vm1, %v2651_v22 }
  0x3d   : > { %2094 = vmatpush3.xpose.msk.msra.mxu1 %vm251_vm1, %v2655_v23  ;;  %2060 = vmatprep.subr.mxu0 %v2445_v1 }
  0x3e   : > { %2095 = vmatprep.subr.mxu1 %v2445_v1 }
  0x40   : > { %2061 = vmatpush3.xpose.msk.msra.mxu0 %vm251_vm1, %v2663_v24 }
  0x41   : > { %2096 = vmatpush3.xpose.msk.msra.mxu1 %vm251_vm1, %v2667_v25  ;;  %2062 = vmatprep.subr.mxu0 %v2445_v1 }
  0x42   : > { %2097 = vmatprep.subr.mxu1 %v2445_v1 }
  0x44   : > { %2063 = vmatpush3.xpose.msk.msra.mxu0 %vm251_vm1, %v2675_v26 }
  0x45   : > { %2098 = vmatpush3.xpose.msk.msra.mxu1 %vm251_vm1, %v2679_v27  ;;  %2064 = vmatprep.subr.mxu0 %v2445_v1 }
  0x46   : > { %2099 = vmatprep.subr.mxu1 %v2445_v1 }
  0x48   : > { %2065 = vmatpush3.xpose.msk.msra.mxu0 %vm251_vm1, %v2687_v28 }
  0x49   : > { %2100 = vmatpush3.xpose.msk.msra.mxu1 %vm251_vm1, %v2691_v29  ;;  %2066 = vmatprep.subr.mxu0 %v2445_v1 }
  0x4a   : > { %2101 = vmatprep.subr.mxu1 %v2445_v1 }
  0x4c   : > { %2067 = vmatpush3.xpose.msk.msra.mxu0 %vm251_vm1, %v233_v30 }
  0x4d   : > { %2102 = vmatpush3.xpose.msk.msra.mxu1 %vm251_vm1, %v216_v31  ;;  %2068 = vmatprep.subr.mxu0 %v2445_v1 }
  0x4e   : > { %2103 = vmatprep.subr.mxu1 %v2445_v1 }
  0x50   : > { %2069 = vmatpush3.xpose.msk.msra.mxu0 %vm251_vm1, %v232_v32 }
  0x51   : > { %2104 = vmatpush3.xpose.msk.msra.mxu1 %vm251_vm1, %v215_v33  ;;  %2108 = vmatprep.subr.mxu0 %v2445_v1 }
  0x52   : > { %2143 = vmatprep.subr.mxu1 %v2445_v1 }
  0x54   : > { %2106 = vmatmul.mubr.msk.f32.vlgmr.msra.gmra.mxu1 %vm251_vm1, %v2509_v0  ;;  %v1798_v0 = vld [vmem:[%s2527_s29 + $0xd8] sm:$0xff] }
  0x55   : > { %2144 = vmatpush3.xpose.msk.msra.mxu1 %vm251_vm1, %v2714_v34  ;;  %2175 = vmatprep.mubr.msk.f32.mxu1 %vm2446_vm0, %v2445_v1 }
  0x56   : > { %2145 = vmatprep.subr.mxu1 %v2445_v1 }
  0x59   : > { %2146 = vmatpush3.xpose.msk.msra.mxu1 %vm251_vm1, %v2724_v35 }
  0x5a   : > { %2147 = vmatprep.subr.mxu1 %v2445_v1 }
  0x5d   : > { %2148 = vmatpush3.xpose.msk.msra.mxu1 %vm251_vm1, %v2533_v3 }
  0x5e   : > { %2149 = vmatprep.subr.mxu1 %v2445_v1 }
  0x61   : > { %2150 = vmatpush3.xpose.msk.msra.mxu1 %vm251_vm1, %v2546_v5 }
  0x62   : > { %2151 = vmatprep.subr.mxu1 %v2445_v1 }
  0x65   : > { %2152 = vmatpush3.xpose.msk.msra.mxu1 %vm251_vm1, %v2559_v7 }
  0x66   : > { %2153 = vmatprep.subr.mxu1 %v2445_v1 }
  0x69   : > { %2154 = vmatpush3.xpose.msk.msra.mxu1 %vm251_vm1, %v2571_v9 }
  0x6a   : > { %2155 = vmatprep.subr.mxu1 %v2445_v1 }
  0x6d   : > { %2156 = vmatpush3.xpose.msk.msra.mxu1 %vm251_vm1, %v2583_v11 }
  0x6e   : > { %2157 = vmatprep.subr.mxu1 %v2445_v1 }
  0x71   : > { %2158 = vmatpush3.xpose.msk.msra.mxu1 %vm251_vm1, %v2595_v13 }
  0x72   : > { %2159 = vmatprep.subr.mxu1 %v2445_v1 }
  0x75   : > { %2160 = vmatpush3.xpose.msk.msra.mxu1 %vm251_vm1, %v2607_v15 }
  0x76   : > { %2161 = vmatprep.subr.mxu1 %v2445_v1 }
  0x79   : > { %2162 = vmatpush3.xpose.msk.msra.mxu1 %vm251_vm1, %v2619_v17 }
  0x7a   : > { %2163 = vmatprep.subr.mxu1 %v2445_v1 }
  0x7d   : > { %2164 = vmatpush3.xpose.msk.msra.mxu1 %vm251_vm1, %v2631_v19 }
  0x7e   : > { %2165 = vmatprep.subr.mxu1 %v2445_v1 }
  0x81   : > { %v250_v37 = vpop.permute.xlu0 %249  ;;  %2166 = vmatpush3.xpose.msk.msra.mxu1 %vm251_vm1, %v2643_v21 }
  0x82   : > { %2071 = vmatmul.mubr.msk.f32.vlgmr.msra.gmra.mxu0 %vm251_vm1, %v250_v37  ;;  %2167 = vmatprep.subr.mxu1 %v2445_v1 }
  0x83   : > { %2109 = vmatpush3.xpose.msk.msra.mxu0 %vm251_vm1, %v2756_v36  ;;  %2140 = vmatprep.mubr.msk.f32.mxu0 %vm2446_vm0, %v2445_v1  ;;  %v651_v42 = vpop.permute.xlu1 %650 }
  0x84   : > { %2110 = vmatprep.subr.mxu0 %v2445_v1 }
  0x85   : > { %2168 = vmatpush3.xpose.msk.msra.mxu1 %vm251_vm1, %v2655_v23  ;;  %v509_v56 = vpop.permute.xlu0 %508 }
  0x86   : > { %2169 = vmatprep.subr.mxu1 %v2445_v1 }
  0x87   : > { %2111 = vmatpush3.xpose.msk.msra.mxu0 %vm251_vm1, %v2766_v38  ;;  %v790_v62 = vpop.permute.xlu1 %789 }
  0x88   : > { %2112 = vmatprep.subr.mxu0 %v2445_v1 }
  0x89   : > { %2170 = vmatpush3.xpose.msk.msra.mxu1 %vm251_vm1, %v2667_v25  ;;  %v929_v59 = vpop.permute.xlu0 %928 }
  0x8a   : > { %2171 = vmatprep.subr.mxu1 %v2445_v1 }
  0x8b   : > { %2113 = vmatpush3.xpose.msk.msra.mxu0 %vm251_vm1, %v2777_v39 }
  0x8c   : > { %2114 = vmatprep.subr.mxu0 %v2445_v1 }
  0x8d   : > { %2172 = vmatpush3.xpose.msk.msra.mxu1 %vm251_vm1, %v2679_v27 }
  0x8e   : > { %2173 = vmatprep.subr.mxu1 %v2445_v1 }
  0x8f   : > { %2115 = vmatpush3.xpose.msk.msra.mxu0 %vm251_vm1, %v2786_v40 }
  0x90   : > { %2116 = vmatprep.subr.mxu0 %v2445_v1 }
  0x91   : > { %2174 = vmatpush3.xpose.msk.msra.mxu1 %vm251_vm1, %v2691_v29 }
  0x92   : > { %2213 = vmatprep.subr.mxu1 %v2445_v1 }
  0x93   : > { %2117 = vmatpush3.xpose.msk.msra.mxu0 %vm251_vm1, %v2796_v41 }
  0x94   : > { %2118 = vmatprep.subr.mxu0 %v2445_v1  ;;  %2176 = vmatmul.mubr.msk.f32.vlgmr.msra.gmra.mxu1 %vm251_vm1, %v651_v42 }
  0x95   : > { %2214 = vmatpush3.xpose.msk.msra.mxu1 %vm251_vm1, %v2809_v44  ;;  %2245 = vmatprep.mubr.msk.f32.mxu1 %vm2446_vm0, %v2445_v1 }
  0x96   : > { %2215 = vmatprep.subr.mxu1 %v2445_v1 }
  0x97   : > { %2119 = vmatpush3.xpose.msk.msra.mxu0 %vm251_vm1, %v2805_v43 }
  0x98   : > { %2120 = vmatprep.subr.mxu0 %v2445_v1 }
  0x99   : > { %2216 = vmatpush3.xpose.msk.msra.mxu1 %vm251_vm1, %v2822_v46 }
  0x9a   : > { %2217 = vmatprep.subr.mxu1 %v2445_v1 }
  0x9b   : > { %2121 = vmatpush3.xpose.msk.msra.mxu0 %vm251_vm1, %v2818_v45 }
  0x9c   : > { %2122 = vmatprep.subr.mxu0 %v2445_v1 }
  0x9d   : > { %2218 = vmatpush3.xpose.msk.msra.mxu1 %vm251_vm1, %v2756_v36 }
  0x9e   : > { %2219 = vmatprep.subr.mxu1 %v2445_v1 }
  0x9f   : > { %2123 = vmatpush3.xpose.msk.msra.mxu0 %vm251_vm1, %v2832_v47 }
  0xa0   : > { %2124 = vmatprep.subr.mxu0 %v2445_v1 }
  0xa1   : > { %2220 = vmatpush3.xpose.msk.msra.mxu1 %vm251_vm1, %v2766_v38 }
  0xa2   : > { %2221 = vmatprep.subr.mxu1 %v2445_v1 }
  0xa3   : > { %2125 = vmatpush3.xpose.msk.msra.mxu0 %vm251_vm1, %v2841_v48 }
  0xa4   : > { %2126 = vmatprep.subr.mxu0 %v2445_v1 }
  0xa5   : > { %2222 = vmatpush3.xpose.msk.msra.mxu1 %vm251_vm1, %v2777_v39 }
  0xa6   : > { %2223 = vmatprep.subr.mxu1 %v2445_v1 }
  0xa7   : > { %2127 = vmatpush3.xpose.msk.msra.mxu0 %vm251_vm1, %v2850_v49 }
  0xa8   : > { %2128 = vmatprep.subr.mxu0 %v2445_v1 }
  0xa9   : > { %2224 = vmatpush3.xpose.msk.msra.mxu1 %vm251_vm1, %v2786_v40 }
  0xaa   : > { %2225 = vmatprep.subr.mxu1 %v2445_v1 }
  0xab   : > { %2129 = vmatpush3.xpose.msk.msra.mxu0 %vm251_vm1, %v2859_v50 }
  0xac   : > { %2130 = vmatprep.subr.mxu0 %v2445_v1 }
  0xad   : > { %2226 = vmatpush3.xpose.msk.msra.mxu1 %vm251_vm1, %v2796_v41 }
  0xae   : > { %2227 = vmatprep.subr.mxu1 %v2445_v1 }
  0xaf   : > { %2131 = vmatpush3.xpose.msk.msra.mxu0 %vm251_vm1, %v2868_v51 }
  0xb0   : > { %2132 = vmatprep.subr.mxu0 %v2445_v1 }
  0xb1   : > { %2228 = vmatpush3.xpose.msk.msra.mxu1 %vm251_vm1, %v2805_v43 }
  0xb2   : > { %2229 = vmatprep.subr.mxu1 %v2445_v1 }
  0xb3   : > { %2133 = vmatpush3.xpose.msk.msra.mxu0 %vm251_vm1, %v495_v52 }
  0xb4   : > { %2134 = vmatprep.subr.mxu0 %v2445_v1 }
  0xb5   : > { %2230 = vmatpush3.xpose.msk.msra.mxu1 %vm251_vm1, %v2818_v45 }
  0xb6   : > { %2231 = vmatprep.subr.mxu1 %v2445_v1 }
  0xb7   : > { %2135 = vmatpush3.xpose.msk.msra.mxu0 %vm251_vm1, %v494_v53 }
  0xb8   : > { %2136 = vmatprep.subr.mxu0 %v2445_v1 }
  0xb9   : > { %2232 = vmatpush3.xpose.msk.msra.mxu1 %vm251_vm1, %v2832_v47 }
  0xba   : > { %2233 = vmatprep.subr.mxu1 %v2445_v1 }
  0xbb   : > { %2137 = vmatpush3.xpose.msk.msra.mxu0 %vm251_vm1, %v493_v54 }
  0xbc   : > { %2138 = vmatprep.subr.mxu0 %v2445_v1 }
  0xbd   : > { %2234 = vmatpush3.xpose.msk.msra.mxu1 %vm251_vm1, %v2841_v48 }
  0xbe   : > { %2235 = vmatprep.subr.mxu1 %v2445_v1 }
  0xbf   : > { %2139 = vmatpush3.xpose.msk.msra.mxu0 %vm251_vm1, %v492_v55 }
  0xc0   : > { %2178 = vmatprep.subr.mxu0 %v2445_v1 }
  0xc1   : > { %2236 = vmatpush3.xpose.msk.msra.mxu1 %vm251_vm1, %v2850_v49 }
  0xc2   : > { %2141 = vmatmul.mubr.msk.f32.vlgmr.msra.gmra.mxu0 %vm251_vm1, %v509_v56  ;;  %2237 = vmatprep.subr.mxu1 %v2445_v1 }
  0xc3   : > { %2179 = vmatpush3.xpose.msk.msra.mxu0 %vm251_vm1, %v1731_v57  ;;  %2210 = vmatprep.mubr.msk.f32.mxu0 %vm2446_vm0, %v2445_v1 }
  0xc4   : > { %2180 = vmatprep.subr.mxu0 %v2445_v1 }
  0xc5   : > { %2238 = vmatpush3.xpose.msk.msra.mxu1 %vm251_vm1, %v2859_v50 }
  0xc6   : > { %2239 = vmatprep.subr.mxu1 %v2445_v1 }
  0xc7   : > { %2181 = vmatpush3.xpose.msk.msra.mxu0 %vm251_vm1, %v1730_v58 }
  0xc8   : > { %2182 = vmatprep.subr.mxu0 %v2445_v1 }
  0xc9   : > { %2240 = vmatpush3.xpose.msk.msra.mxu1 %vm251_vm1, %v2868_v51 }
  0xca   : > { %2241 = vmatprep.subr.mxu1 %v2445_v1 }
  0xcb   : > { %2183 = vmatpush3.xpose.msk.msra.mxu0 %vm251_vm1, %v2530_v2 }
  0xcc   : > { %2184 = vmatprep.subr.mxu0 %v2445_v1 }
  0xcd   : > { %2242 = vmatpush3.xpose.msk.msra.mxu1 %vm251_vm1, %v495_v52 }
  0xce   : > { %2243 = vmatprep.subr.mxu1 %v2445_v1 }
  0xcf   : > { %2185 = vmatpush3.xpose.msk.msra.mxu0 %vm251_vm1, %v2542_v4 }
  0xd0   : > { %2186 = vmatprep.subr.mxu0 %v2445_v1 }
  0xd1   : > { %2244 = vmatpush3.xpose.msk.msra.mxu1 %vm251_vm1, %v494_v53 }
  0xd2   : > { %2283 = vmatprep.subr.mxu1 %v2445_v1 }
  0xd3   : > { %2187 = vmatpush3.xpose.msk.msra.mxu0 %vm251_vm1, %v2555_v6 }
  0xd4   : > { %2188 = vmatprep.subr.mxu0 %v2445_v1  ;;  %2246 = vmatmul.mubr.msk.f32.vlgmr.msra.gmra.mxu1 %vm251_vm1, %v929_v59 }
  0xd5   : > { %2284 = vmatpush3.xpose.msk.msra.mxu1 %vm251_vm1, %v1832_v60  ;;  %2315 = vmatprep.mubr.msk.f32.mxu1 %vm2446_vm0, %v2445_v1 }
  0xd6   : > { %2285 = vmatprep.subr.mxu1 %v2445_v1 }
  0xd7   : > { %2189 = vmatpush3.xpose.msk.msra.mxu0 %vm251_vm1, %v2567_v8 }
  0xd8   : > { %2190 = vmatprep.subr.mxu0 %v2445_v1 }
  0xd9   : > { %2286 = vmatpush3.xpose.msk.msra.mxu1 %vm251_vm1, %v1831_v61 }
  0xda   : > { %2287 = vmatprep.subr.mxu1 %v2445_v1 }
  0xdb   : > { %2191 = vmatpush3.xpose.msk.msra.mxu0 %vm251_vm1, %v2579_v10 }
  0xdc   : > { %2192 = vmatprep.subr.mxu0 %v2445_v1 }
  0xdd   : > { %2288 = vmatpush3.xpose.msk.msra.mxu1 %vm251_vm1, %v1731_v57 }
  0xde   : > { %2289 = vmatprep.subr.mxu1 %v2445_v1 }
  0xdf   : > { %2193 = vmatpush3.xpose.msk.msra.mxu0 %vm251_vm1, %v2591_v12 }
  0xe0   : > { %2194 = vmatprep.subr.mxu0 %v2445_v1 }
  0xe1   : > { %2290 = vmatpush3.xpose.msk.msra.mxu1 %vm251_vm1, %v1730_v58 }
  0xe2   : > { %2291 = vmatprep.subr.mxu1 %v2445_v1 }
  0xe3   : > { %2195 = vmatpush3.xpose.msk.msra.mxu0 %vm251_vm1, %v2603_v14 }
  0xe4   : > { %2196 = vmatprep.subr.mxu0 %v2445_v1 }
  0xe5   : > { %2292 = vmatpush3.xpose.msk.msra.mxu1 %vm251_vm1, %v2530_v2  ;;  %v1210_v2 = vpop.permute.xlu0 %1209 }
  0xe6   : > { %2293 = vmatprep.subr.mxu1 %v2445_v1 }
  0xe7   : > { %2197 = vmatpush3.xpose.msk.msra.mxu0 %vm251_vm1, %v2615_v16 }
  0xe8   : > { %2198 = vmatprep.subr.mxu0 %v2445_v1 }
  0xe9   : > { %2294 = vmatpush3.xpose.msk.msra.mxu1 %vm251_vm1, %v2542_v4 }
  0xea   : > { %2295 = vmatprep.subr.mxu1 %v2445_v1 }
  0xeb   : > { %2199 = vmatpush3.xpose.msk.msra.mxu0 %vm251_vm1, %v2627_v18 }
  0xec   : > { %2200 = vmatprep.subr.mxu0 %v2445_v1 }
  0xed   : > { %2296 = vmatpush3.xpose.msk.msra.mxu1 %vm251_vm1, %v2555_v6 }
  0xee   : > { %2297 = vmatprep.subr.mxu1 %v2445_v1 }
  0xef   : > { %2201 = vmatpush3.xpose.msk.msra.mxu0 %vm251_vm1, %v2639_v20 }
  0xf0   : > { %2202 = vmatprep.subr.mxu0 %v2445_v1 }
  0xf1   : > { %2298 = vmatpush3.xpose.msk.msra.mxu1 %vm251_vm1, %v2567_v8 }
  0xf2   : > { %2299 = vmatprep.subr.mxu1 %v2445_v1 }
  0xf3   : > { %2203 = vmatpush3.xpose.msk.msra.mxu0 %vm251_vm1, %v2651_v22 }
  0xf4   : > { %2204 = vmatprep.subr.mxu0 %v2445_v1 }
  0xf5   : > { %2300 = vmatpush3.xpose.msk.msra.mxu1 %vm251_vm1, %v2579_v10  ;;  %v1864_v10 = vld [vmem:[%s2527_s29 + $0xda] sm:$0xff] }
  0xf6   : > { %2301 = vmatprep.subr.mxu1 %v2445_v1 }
  0xf7   : > { %2205 = vmatpush3.xpose.msk.msra.mxu0 %vm251_vm1, %v2663_v24 }
  0xf8   : > { %2206 = vmatprep.subr.mxu0 %v2445_v1 }
  0xf9   : > { %2302 = vmatpush3.xpose.msk.msra.mxu1 %vm251_vm1, %v2591_v12 }
  0xfa   : > { %2303 = vmatprep.subr.mxu1 %v2445_v1 }
  0xfb   : > { %2207 = vmatpush3.xpose.msk.msra.mxu0 %vm251_vm1, %v2675_v26 }
  0xfc   : > { %2208 = vmatprep.subr.mxu0 %v2445_v1 }
  0xfd   : > { %2304 = vmatpush3.xpose.msk.msra.mxu1 %vm251_vm1, %v2603_v14 }
  0xfe   : > { %2305 = vmatprep.subr.mxu1 %v2445_v1 }
  0xff   : > { %2209 = vmatpush3.xpose.msk.msra.mxu0 %vm251_vm1, %v2687_v28 }
 0x100   : > { %2248 = vmatprep.subr.mxu0 %v2445_v1 }
 0x101   : > { %2306 = vmatpush3.xpose.msk.msra.mxu1 %vm251_vm1, %v2615_v16 }
 0x102   : > { %2211 = vmatmul.mubr.msk.f32.vlgmr.msra.gmra.mxu0 %vm251_vm1, %v790_v62  ;;  %2307 = vmatprep.subr.mxu1 %v2445_v1 }
 0x103   : > { %2249 = vmatpush3.xpose.msk.msra.mxu0 %vm251_vm1, %v1799_v63  ;;  %2280 = vmatprep.mubr.msk.f32.mxu0 %vm2446_vm0, %v2445_v1 }
 0x104   : > { %2250 = vmatprep.subr.mxu0 %v2445_v1 }
 0x105   : > { %2308 = vmatpush3.xpose.msk.msra.mxu1 %vm251_vm1, %v2627_v18 }
 0x106   : > { %2309 = vmatprep.subr.mxu1 %v2445_v1 }
 0x107   : > { %2251 = vmatpush3.xpose.msk.msra.mxu0 %vm251_vm1, %v1798_v0 }
 0x108   : > { %2252 = vmatprep.subr.mxu0 %v2445_v1 }
 0x109   : > { %2310 = vmatpush3.xpose.msk.msra.mxu1 %vm251_vm1, %v2639_v20 }
 0x10a   : > { %2311 = vmatprep.subr.mxu1 %v2445_v1 }
 0x10b   : > { %2253 = vmatpush3.xpose.msk.msra.mxu0 %vm251_vm1, %v2714_v34 }
 0x10c   : > { %2254 = vmatprep.subr.mxu0 %v2445_v1 }
 0x10d   : > { %2312 = vmatpush3.xpose.msk.msra.mxu1 %vm251_vm1, %v2651_v22 }
 0x10e   : > { %2313 = vmatprep.subr.mxu1 %v2445_v1 }
 0x10f   : > { %2255 = vmatpush3.xpose.msk.msra.mxu0 %vm251_vm1, %v2724_v35 }
 0x110   : > { %2256 = vmatprep.subr.mxu0 %v2445_v1 }
 0x111   : > { %2314 = vmatpush3.xpose.msk.msra.mxu1 %vm251_vm1, %v2663_v24 }
 0x113   : > { %2257 = vmatpush3.xpose.msk.msra.mxu0 %vm251_vm1, %v2533_v3  ;;  %v1071_v3 = vpop.permute.xlu1 %1070 }
 0x114   : > { %2258 = vmatprep.subr.mxu0 %v2445_v1  ;;  %v488_v4 = vpop.f32.mrf.mxu1  ;;  %2316 = vmatmul.mubr.msk.f32.vlgmr.msra.gmra.mxu1 %vm251_vm1, %v1210_v2 }
 0x116   : > { %v2107_v6 = vpop.f32.mrf.mxu1 }
 0x117   : > { %2259 = vmatpush3.xpose.msk.msra.mxu0 %vm251_vm1, %v2546_v5  ;;  %v1865_v5 = vld [vmem:[%s2527_s29 + $0xe2] sm:$0xff] }
 0x118   : > { %2260 = vmatprep.subr.mxu0 %v2445_v1 }
 0x11b   : > { %2261 = vmatpush3.xpose.msk.msra.mxu0 %vm251_vm1, %v2559_v7 }
 0x11c   : > { %2262 = vmatprep.subr.mxu0 %v2445_v1 }
 0x11f   : > { %2263 = vmatpush3.xpose.msk.msra.mxu0 %vm251_vm1, %v2571_v9 }
 0x120   : > { %2264 = vmatprep.subr.mxu0 %v2445_v1 }
 0x123   : > { %2265 = vmatpush3.xpose.msk.msra.mxu0 %vm251_vm1, %v2583_v11 }
 0x124   : > { %2266 = vmatprep.subr.mxu0 %v2445_v1 }
 0x127   : > { %2267 = vmatpush3.xpose.msk.msra.mxu0 %vm251_vm1, %v2595_v13  ;;  %v1349_v13 = vpop.permute.xlu1 %1348 }
 0x128   : > { %2268 = vmatprep.subr.mxu0 %v2445_v1 }
 0x12b   : > { %2269 = vmatpush3.xpose.msk.msra.mxu0 %vm251_vm1, %v2607_v15 }
 0x12c   : > { %2270 = vmatprep.subr.mxu0 %v2445_v1 }
 0x12f   : > { %2271 = vmatpush3.xpose.msk.msra.mxu0 %vm251_vm1, %v2619_v17 }
 0x130   : > { %2272 = vmatprep.subr.mxu0 %v2445_v1 }
 0x133   : > { %2273 = vmatpush3.xpose.msk.msra.mxu0 %vm251_vm1, %v2631_v19 }
 0x134   : > { %2274 = vmatprep.subr.mxu0 %v2445_v1 }
 0x137   : > { %2275 = vmatpush3.xpose.msk.msra.mxu0 %vm251_vm1, %v2643_v21 }
 0x138   : > { %2276 = vmatprep.subr.mxu0 %v2445_v1 }
 0x13b   : > { %2277 = vmatpush3.xpose.msk.msra.mxu0 %vm251_vm1, %v2655_v23 }
 0x13c   : > { %2278 = vmatprep.subr.mxu0 %v2445_v1 }
 0x13f   : > { %2279 = vmatpush3.xpose.msk.msra.mxu0 %vm251_vm1, %v2667_v25 }
 0x140   : > { %2318 = vmatprep.subr.mxu0 %v2445_v1 }
 0x142   : > { %2281 = vmatmul.mubr.msk.f32.vlgmr.msra.gmra.mxu0 %vm251_vm1, %v1071_v3  ;;  %v368_v7 = vpop.f32.mrf.mxu0 }
 0x143   : > { %v489_v8 = vadd.f32 %v488_v4, %v368_v7  ;;  %2319 = vmatpush3.xpose.msk.msra.mxu0 %vm251_vm1, %v1865_v5  ;;  %2350 = vmatprep.mubr.msk.f32.mxu0 %vm2446_vm0, %v2445_v1 }
 0x144   : > { %v2072_v9 = vpop.f32.mrf.mxu0  ;;  %2320 = vmatprep.subr.mxu0 %v2445_v1 }
 0x147   : > { %2321 = vmatpush3.xpose.msk.msra.mxu0 %vm251_vm1, %v1864_v10 }
 0x148   : > { %2322 = vmatprep.subr.mxu0 %v2445_v1 }
 0x14b   : > { %2323 = vmatpush3.xpose.msk.msra.mxu0 %vm251_vm1, %v2809_v44 }
 0x14c   : > { %2324 = vmatprep.subr.mxu0 %v2445_v1 }
 0x14f   : > { %2325 = vmatpush3.xpose.msk.msra.mxu0 %vm251_vm1, %v2822_v46 }
 0x150   : > { %2326 = vmatprep.subr.mxu0 %v2445_v1 }
 0x153   : > { %2327 = vmatpush3.xpose.msk.msra.mxu0 %vm251_vm1, %v2756_v36 }
 0x154   : > { %2328 = vmatprep.subr.mxu0 %v2445_v1  ;;  %v768_v11 = vpop.f32.mrf.mxu1 }
 0x156   : > { %v2177_v12 = vpop.f32.mrf.mxu1 }
 0x157   : > { %2329 = vmatpush3.xpose.msk.msra.mxu0 %vm251_vm1, %v2766_v38 }
 0x158   : > { %2330 = vmatprep.subr.mxu0 %v2445_v1 }
 0x15b   : > { %2331 = vmatpush3.xpose.msk.msra.mxu0 %vm251_vm1, %v2777_v39 }
 0x15c   : > { %2332 = vmatprep.subr.mxu0 %v2445_v1 }
 0x15f   : > { %2333 = vmatpush3.xpose.msk.msra.mxu0 %vm251_vm1, %v2786_v40 }
 0x160   : > { %2334 = vmatprep.subr.mxu0 %v2445_v1 }
 0x163   : > { %2335 = vmatpush3.xpose.msk.msra.mxu0 %vm251_vm1, %v2796_v41 }
 0x164   : > { %2336 = vmatprep.subr.mxu0 %v2445_v1 }
 0x167   : > { %2337 = vmatpush3.xpose.msk.msra.mxu0 %vm251_vm1, %v2805_v43 }
 0x168   : > { %2338 = vmatprep.subr.mxu0 %v2445_v1 }
 0x16b   : > { %2339 = vmatpush3.xpose.msk.msra.mxu0 %vm251_vm1, %v2818_v45 }
 0x16c   : > { %2340 = vmatprep.subr.mxu0 %v2445_v1 }
 0x16f   : > { %2341 = vmatpush3.xpose.msk.msra.mxu0 %vm251_vm1, %v2832_v47 }
 0x170   : > { %2342 = vmatprep.subr.mxu0 %v2445_v1 }
 0x173   : > { %2343 = vmatpush3.xpose.msk.msra.mxu0 %vm251_vm1, %v2841_v48 }
 0x174   : > { %2344 = vmatprep.subr.mxu0 %v2445_v1 }
 0x177   : > { %2345 = vmatpush3.xpose.msk.msra.mxu0 %vm251_vm1, %v2850_v49 }
 0x178   : > { %2346 = vmatprep.subr.mxu0 %v2445_v1 }
 0x17b   : > { %2347 = vmatpush3.xpose.msk.msra.mxu0 %vm251_vm1, %v2859_v50 }
 0x17c   : > { %2348 = vmatprep.subr.mxu0 %v2445_v1 }
 0x17f   : > { %2349 = vmatpush3.xpose.msk.msra.mxu0 %vm251_vm1, %v2868_v51 }
 0x182   : > { %v626_v14 = vpop.f32.mrf.mxu0  ;;  %2351 = vmatmul.mubr.msk.f32.vlgmr.msra.gmra.mxu0 %vm251_vm1, %v1349_v13 }
 0x183   : > { %v630_v15 = vadd.f32 %v626_v14, %v489_v8 }
 0x184   : > { %v2142_v16 = vpop.f32.mrf.mxu0 }
 0x185   : > { %v772_v17 = vadd.f32 %v768_v11, %v630_v15 }
 0x194   : > { %v1046_v18 = vpop.f32.mrf.mxu1 }
 0x196   : > { %v2247_v19 = vpop.f32.mrf.mxu1 }
 0x1c2   : > { %v907_v20 = vpop.f32.mrf.mxu0 }
 0x1c3   : > { %v911_v21 = vadd.f32 %v907_v20, %v772_v17 }
 0x1c4   : > { %v2212_v22 = vpop.f32.mrf.mxu0 }
 0x1c5   : > { %v1050_v23 = vadd.f32 %v1046_v18, %v911_v21 }
 0x1d4   : > { %v1327_v1 = vpop.f32.mrf.mxu1 }
 0x1d6   : > { %v2317_v24 = vpop.f32.mrf.mxu1 }
 0x202   : > { %v1188_v25 = vpop.f32.mrf.mxu0 }
 0x203   : > { %v1192_v26 = vadd.f32 %v1188_v25, %v1050_v23 }
 0x204   : > { %v2282_v27 = vpop.f32.mrf.mxu0 }
 0x205   : > { %v1331_v28 = vadd.f32 %v1327_v1, %v1192_v26 }
 0x242   : > { %v1466_v29 = vpop.f32.mrf.mxu0 }
 0x243   : > { %v1470_v30 = vadd.f32 %v1466_v29, %v1331_v28 }
 0x244   : > { %v2352_v31 = vpop.f32.mrf.mxu0 }
 0x245   : > { %1471 = vadd.xlane.f32.xlu0 %v1470_v30 }
 0x2ce   : > { %v1472_v32 = vpop.xlane.xlu0 %1471 }
 0x2cf   : > { %v1473_v33 = vmul.f32 0.0078125, %v1472_v32  ;;  %1479 = vst.msk [vmem:[%s203_s20] sm:$0xff] %vm1478_vm2, %v1472_v32 }
 0x2d1   : > { %v1474_v34 = vsub.f32 %v1470_v30, %v1473_v33 }
 0x2d3   : > { %v1475_v35 = vmul.f32 %v1474_v34, %v1474_v34 }
 0x2d5   : > { %1476 = vadd.xlane.f32.xlu1 %v1475_v35 }
 0x35e   : > { %v1477_v36 = vpop.xlane.xlu1 %1476 }
 0x35f   : > { %1480 = vst.msk [vmem:[%s211_s23] sm:$0xff] %vm1478_vm2, %v1477_v36 }
 0x360 PF: > { %s14_s16 = sadd.s32 1, %s2442_s16   ;;  %s3144_s12 = smov %s2434_s14 }
 0x361   : > { %p11_p7 = scmp.ge.s32.totalorder %s14_s16, 6   ;;  %s3145_s13 = smov %s2438_s15 }
 0x362   : > { %s3146_s14 = smov %s3149_s17  ;;  %s3147_s15 = smov %s3153_s18 }
 0x363   :  { %13 = sbr.rel (!%p11_p7) target bundleno = 3 (0x3), region = 73 }

</bundles_post_ra>
